<compile_context>
chip_gen: v7x
topology: tpu7x:2x2x1
jax: 0.10.0
libtpu: 0.0.40
codegen_flags: <defaults>
</compile_context>

<pallas_src>
import functools

import jax
import jax.numpy as jnp
from jax import lax
from jax.experimental import pallas as pl
from jax.experimental.pallas import tpu as pltpu


def _round_up(x, m):
    return (x + m - 1) // m * m


def _simclr_kernel(a_ref, p_ref, c_ref, out_ref, m_sc, l_sc, *,
                   inv_temp, tm, tn, b_actual, n_pad_cols, rows_padded,
                   use_bf16_matmul):
    i = pl.program_id(0)            # anchor row tile (parallel)
    j = pl.program_id(1)            # contrast column tile (reduction)
    n_col = pl.num_programs(1)

    @pl.when(j == 0)
    def _init():
        m_sc[...] = jnp.full_like(m_sc, -1e30)
        l_sc[...] = jnp.zeros_like(l_sc)

    a = a_ref[...]                                              # [tm, dim]
    # Fold 1/T into the small anchor tile (f32) instead of scaling [tm, tn].
    a32 = a.astype(jnp.float32) * jnp.float32(inv_temp)

    mm_dtype = jnp.bfloat16 if use_bf16_matmul else a.dtype
    a_mm = a32.astype(mm_dtype)
    c_mm = c_ref[...].astype(mm_dtype)                          # [dim, tn]

    # One [tm,dim] x [dim,tn] MXU matmul per step, f32 accumulation,
    # contracting the RHS major dim -> no in-kernel transposes.
    d = lax.dot_general(a_mm, c_mm, (((1,), (0,)), ((), ())),
                        preferred_element_type=jnp.float32)     # [tm, tn]

    # Mask the anchor's own (self) column directly in the MXU output, so the
    # denominator never relies on cancelling a value from a different path.
    row_g = i * tm + lax.broadcasted_iota(jnp.int32, (tm, tn), 0)
    col_g = j * tn + lax.broadcasted_iota(jnp.int32, (tm, tn), 1)
    d = jnp.where(col_g == row_g, jnp.float32(-1e30), d)

    # Online logsumexp update (running max m, running exp-sum l).
    m_prev = m_sc[...]
    m_new = jnp.maximum(m_prev, jnp.max(d, axis=1, keepdims=True))
    alpha = jnp.exp(m_prev - m_new)
    l_sc[...] = alpha * l_sc[...] + jnp.sum(jnp.exp(d - m_new), axis=1,
                                            keepdims=True)
    m_sc[...] = m_new

    @pl.when(j == n_col - 1)
    def _finalize():
        m = m_sc[...]
        l = l_sc[...]
        if n_pad_cols > 0:
            # Zero-padded contrast columns have logit exactly 0; remove their
            # exp(0 - m) contributions analytically (no per-step column mask).
            l = l - jnp.float32(n_pad_cols) * jnp.exp(-m)
        # Positive logit on the f32 VPU path (cheap [tm, dim] mul-reduce).
        pos = jnp.sum(a32 * p_ref[...].astype(jnp.float32), axis=1,
                      keepdims=True)
        per_row = m + jnp.log(l) - pos                          # [tm, 1]
        if rows_padded:
            rowi = i * tm + lax.broadcasted_iota(jnp.int32, (tm, 1), 0)
            per_row = jnp.where(rowi < b_actual, per_row, 0.0)
        # Lane-dense (8, 128) partial-sum slab per row tile.
        out_ref[...] = jnp.full((8, 128), jnp.sum(per_row), dtype=jnp.float32)


def simclr_loss(features, temperature=0.5, block_rows=None, block_cols=512,
                use_bf16_matmul=False):
    """features: [b, 2, dim]. Returns the scalar SimCLR loss (reduction='mean').

    TODO(synk): reduction='none' (per-row losses) is not emitted; only 'mean'.
    """
    b, n, dim = features.shape
    assert n == 2
    itemsize = jnp.dtype(features.dtype).itemsize

    v0 = features[:, 0, :]                     # anchor == view 0
    v1 = features[:, 1, :]                     # positive == view 1

    dim_pad = _round_up(dim, 128)

    # Row tile: multiple of 8 (sublane), modest so everything (incl. v7x's
    # 64 MiB/TC) has headroom even for large dim.
    if block_rows is None:
        block_rows = 256
    tm = _round_up(min(block_rows, _round_up(b, 8)), 8)
    while tm > 8 and tm * dim_pad * itemsize > (2 << 20):
        tm = _round_up(tm // 2, 8)
    b_pad = _round_up(b, tm)

    # Contrast column tiling (lane-aligned to 128, capped by block_cols).
    c_pad = _round_up(2 * b_pad, 128)
    tn = 128
    for cand in (512, 256, 128):
        if cand <= block_cols and c_pad % cand == 0:
            tn = cand
            break

    pad_rows, pad_dims = b_pad - b, dim_pad - dim
    if pad_rows or pad_dims:
        pad = ((0, pad_rows), (0, pad_dims))
        v0p, v1p = jnp.pad(v0, pad), jnp.pad(v1, pad)
    else:
        v0p, v1p = v0, v1

    # Concatenate + transpose the contrast matrix ONCE in XLA (one-time cost);
    # the kernel then contracts its leading dim with no per-step transposes.
    contrast = jnp.concatenate([v0p, v1p], axis=0)              # [2*b_pad, dim_pad]
    if c_pad != 2 * b_pad:
        contrast = jnp.pad(contrast, ((0, c_pad - 2 * b_pad), (0, 0)))
    contrast_t = contrast.T                                     # [dim_pad, c_pad]

    num_row_tiles = b_pad // tm
    num_col_tiles = c_pad // tn
    n_pad_cols = c_pad - 2 * b                                  # zero-logit cols

    kernel = functools.partial(
        _simclr_kernel,
        inv_temp=1.0 / float(temperature),
        tm=tm, tn=tn,
        b_actual=b,
        n_pad_cols=n_pad_cols,
        rows_padded=(b_pad != b),
        use_bf16_matmul=bool(use_bf16_matmul),
    )

    # VMEM budget: double-buffered input tiles + f32 temps + scratch + slack.
    mm_itemsize = 2 if use_bf16_matmul else itemsize
    vmem_est = (2 * 2 * tm * dim_pad * itemsize          # anchor + positive tiles
                + 2 * dim_pad * tn * itemsize            # contrast column tile
                + (tm * dim_pad + dim_pad * tn) * mm_itemsize
                + 6 * tm * tn * 4                        # logits / exp temps
                + 4 * tm * 128 * 4                       # m/l scratch (lane-padded)
                + 2 * 8 * 128 * 4)                       # output slab
    vmem_limit = int(min(100 << 20, max(32 << 20, 2 * vmem_est)))

    out = pl.pallas_call(
        kernel,
        out_shape=jax.ShapeDtypeStruct((num_row_tiles * 8, 128), jnp.float32),
        grid=(num_row_tiles, num_col_tiles),
        in_specs=[
            pl.BlockSpec((tm, dim_pad), lambda i, j: (i, 0)),    # anchor rows
            pl.BlockSpec((tm, dim_pad), lambda i, j: (i, 0)),    # positive rows
            pl.BlockSpec((dim_pad, tn), lambda i, j: (0, j)),    # contrast^T cols
        ],
        out_specs=pl.BlockSpec((8, 128), lambda i, j: (i, 0)),
        scratch_shapes=[
            pltpu.VMEM((tm, 1), jnp.float32),                    # running max
            pltpu.VMEM((tm, 1), jnp.float32),                    # running exp-sum
        ],
        compiler_params=pltpu.CompilerParams(
            dimension_semantics=("parallel", "arbitrary"),
            vmem_limit_bytes=vmem_limit,
        ),
        cost_estimate=pl.CostEstimate(
            flops=2 * b_pad * c_pad * dim_pad,
            transcendentals=b_pad * c_pad + 3 * b_pad * num_col_tiles,
            bytes_accessed=(2 * b_pad * dim_pad
                            + num_row_tiles * dim_pad * c_pad) * itemsize
                           + num_row_tiles * 8 * 128 * 4,
        ),
    )(v0p, v1p, contrast_t)

    partials = out[::8, 0]                     # one partial sum per row tile
    return jnp.sum(partials) / jnp.float32(b)


def _reference_simclr_loss(features, temperature):
    """Plain-JAX reference mirroring the PyTorch module, for sanity checking."""
    b, n, dim = features.shape
    anchor = features[:, 0]
    contrast = jnp.concatenate([features[:, 0], features[:, 1]], axis=0)
    dot = jnp.matmul(anchor, contrast.T,
                     precision=lax.Precision.HIGHEST) / temperature
    logits = dot - jnp.max(dot, axis=1, keepdims=True)
    eye = jnp.eye(b, dtype=jnp.float32)
    mask = jnp.tile(eye, (1, 2))
    logits_mask = 1.0 - jnp.concatenate([eye, jnp.zeros((b, b), jnp.float32)],
                                        axis=1)
    mask = mask * logits_mask
    exp_logits = jnp.exp(logits) * logits_mask
    log_prob = logits - jnp.log(exp_logits.sum(1, keepdims=True))
    return -((mask * log_prob).sum(1) / mask.sum(1)).mean()


if __name__ == "__main__":
    key = jax.random.PRNGKey(0)
    k1, k2, k3 = jax.random.split(key, 3)

    def make_features(k, b, dim):
        f = jax.random.normal(k, (b, 2, dim), dtype=jnp.float32)
        # SimCLR feeds L2-normalized projection-head outputs to this loss; raw
        # N(0,1) features at these dims underflow every non-self exp() to 0
        # (NaN in the PyTorch module too), so normalize the demo inputs.
        return f / jnp.linalg.norm(f, axis=-1, keepdims=True)

    # Case 1: ragged shapes -> row/col/dim padding, multi-row-tile grid.
    f1 = make_features(k1, 44, 96)
    loss1 = jax.block_until_ready(simclr_loss(f1, 0.5, block_rows=16,
                                              block_cols=128))
    ref1 = _reference_simclr_loss(f1, 0.5)
    assert bool(jnp.isfinite(loss1)), loss1
    assert jnp.allclose(loss1, ref1, rtol=1e-3, atol=1e-3), (loss1, ref1)

    # Case 2: aligned shapes, default tiling.
    f2 = make_features(k2, 32, 128)
    loss2 = jax.block_until_ready(simclr_loss(f2, 0.5))
    ref2 = _reference_simclr_loss(f2, 0.5)
    assert jnp.allclose(loss2, ref2, rtol=1e-3, atol=1e-3), (loss2, ref2)

    # Case 3: small temperature (self logit dominates the row) -> exercises
    # the in-matrix self-column masking; also run the opt-in bf16 MXU path.
    f3 = make_features(k3, 64, 128)
    loss3 = jax.block_until_ready(simclr_loss(f3, 0.07))
    ref3 = _reference_simclr_loss(f3, 0.07)
    assert jnp.allclose(loss3, ref3, rtol=1e-3, atol=1e-3), (loss3, ref3)

    loss3_bf16 = jax.block_until_ready(
        simclr_loss(f3, 0.07, use_bf16_matmul=True))
    assert bool(jnp.isfinite(loss3_bf16)), loss3_bf16
    assert jnp.allclose(loss3_bf16, ref3, rtol=5e-2, atol=5e-2), (loss3_bf16, ref3)

    print("KERNEL_OK")
</pallas_src>

<mosaic_0001>
module attributes {stable_mosaic.version = 11 : i64} {
  func.func @_simclr_kernel(%arg0: i32, %arg1: i32, %arg2: memref<16x128xf32, #tpu.memory_space<vmem>>, %arg3: memref<16x128xf32, #tpu.memory_space<vmem>>, %arg4: memref<128x128xf32, #tpu.memory_space<vmem>>, %arg5: memref<8x128xf32, #tpu.memory_space<vmem>>, %arg6: memref<16x1xf32, #tpu.memory_space<vmem>>, %arg7: memref<16x1xf32, #tpu.memory_space<vmem>>) attributes {dimension_semantics = [#tpu.dimension_semantics<parallel>, #tpu.dimension_semantics<arbitrary>], iteration_bounds = array<i64: 3, 1>, scalar_prefetch = 0 : i64, scratch_operands = 2 : i64, tpu.core_type = #tpu.core_type<tc>, window_params = [{transform_indices = @transform_0, window_bounds = array<i64: 16, 128>}, {transform_indices = @transform_1, window_bounds = array<i64: 16, 128>}, {transform_indices = @transform_2, window_bounds = array<i64: 128, 128>}, {transform_indices = @transform_3, window_bounds = array<i64: 8, 128>}]} {
    %c0_i32 = arith.constant 0 : i32
    %0 = arith.cmpi eq, %arg1, %c0_i32 : i32
    %1 = arith.extui %0 : i1 to i32
    %c0_i32_0 = arith.constant 0 : i32
    %2 = arith.cmpi ne, %1, %c0_i32_0 : i32
    scf.if %2 {
      %cst_18 = arith.constant -1.000000e+30 : f32
      %38 = vector.broadcast %cst_18 : f32 to vector<16x1xf32>
      %c0_19 = arith.constant 0 : index
      %c0_20 = arith.constant 0 : index
      %39 = vector.load %arg6[%c0_19, %c0_20] : memref<16x1xf32, #tpu.memory_space<vmem>>, vector<16x1xf32>
      tpu.vector_store %arg6[%c0_19, %c0_20], %38 {strides = array<i32>} : memref<16x1xf32, #tpu.memory_space<vmem>>, vector<16x1xf32>,
      %cst_21 = arith.constant 0.000000e+00 : f32
      %40 = vector.broadcast %cst_21 : f32 to vector<16x1xf32>
      %c0_22 = arith.constant 0 : index
      %c0_23 = arith.constant 0 : index
      %41 = vector.load %arg7[%c0_22, %c0_23] : memref<16x1xf32, #tpu.memory_space<vmem>>, vector<16x1xf32>
      tpu.vector_store %arg7[%c0_22, %c0_23], %40 {strides = array<i32>} : memref<16x1xf32, #tpu.memory_space<vmem>>, vector<16x1xf32>,
    } else {
    }
    %c0 = arith.constant 0 : index
    %c0_1 = arith.constant 0 : index
    %3 = vector.load %arg2[%c0, %c0_1] : memref<16x128xf32, #tpu.memory_space<vmem>>, vector<16x128xf32>
    %cst = arith.constant 2.000000e+00 : f32
    %4 = vector.broadcast %cst : f32 to vector<16x128xf32>
    %5 = arith.mulf %3, %4 : vector<16x128xf32>
    %c0_2 = arith.constant 0 : index
    %c0_3 = arith.constant 0 : index
    %6 = vector.load %arg4[%c0_2, %c0_3] : memref<128x128xf32, #tpu.memory_space<vmem>>, vector<128x128xf32>
    %cst_4 = arith.constant dense<0.000000e+00> : vector<16x128xf32>
    %7 = tpu.matmul %5, %6, %cst_4 {dimension_numbers = #tpu.dot_dimension_numbers<[1], [0], [0], [1], [0, 0, 1, 1], [], []>} : vector<16x128xf32>, vector<128x128xf32>, vector<16x128xf32> -> vector<16x128xf32>
    %c16_i32 = arith.constant 16 : i32
    %8 = arith.muli %arg0, %c16_i32 : i32
    %9 = tpu.iota {dimensions = array<i32: 0>} : vector<16x128xi32>
    %10 = vector.broadcast %8 : i32 to vector<16x128xi32>
    %11 = arith.addi %10, %9 : vector<16x128xi32>
    %c128_i32 = arith.constant 128 : i32
    %12 = arith.muli %arg1, %c128_i32 : i32
    %13 = tpu.iota {dimensions = array<i32: 1>} : vector<16x128xi32>
    %14 = vector.broadcast %12 : i32 to vector<16x128xi32>
    %15 = arith.addi %14, %13 : vector<16x128xi32>
    %16 = arith.cmpi eq, %15, %11 : vector<16x128xi32>
    %cst_5 = arith.constant -1.000000e+30 : f32
    %17 = vector.broadcast %cst_5 : f32 to vector<16x128xf32>
    %18 = arith.select %16, %17, %7 : vector<16x128xi1>, vector<16x128xf32>
    %c0_6 = arith.constant 0 : index
    %c0_7 = arith.constant 0 : index
    %19 = vector.load %arg6[%c0_6, %c0_7] : memref<16x1xf32, #tpu.memory_space<vmem>>, vector<16x1xf32>
    %cst_8 = arith.constant dense<0xFF800000> : vector<16xf32>
    %20 = vector.multi_reduction <maximumf>, %18, %cst_8 [1] : vector<16x128xf32> to vector<16xf32>
    %21 = vector.shape_cast %20 : vector<16xf32> to vector<16x1xf32>
    %22 = arith.maximumf %19, %21 : vector<16x1xf32>
    %23 = arith.subf %19, %22 : vector<16x1xf32>
    %24 = math.exp %23 : vector<16x1xf32>
    %c0_9 = arith.constant 0 : index
    %c0_10 = arith.constant 0 : index
    %25 = vector.load %arg7[%c0_9, %c0_10] : memref<16x1xf32, #tpu.memory_space<vmem>>, vector<16x1xf32>
    %26 = arith.mulf %24, %25 : vector<16x1xf32>
    %27 = vector.broadcast %22 : vector<16x1xf32> to vector<16x128xf32>
    %28 = arith.subf %18, %27 : vector<16x128xf32>
    %29 = math.exp %28 : vector<16x128xf32>
    %cst_11 = arith.constant dense<0.000000e+00> : vector<16xf32>
    %30 = vector.multi_reduction <add>, %29, %cst_11 [1] : vector<16x128xf32> to vector<16xf32>
    %31 = vector.shape_cast %30 : vector<16xf32> to vector<16x1xf32>
    %32 = arith.addf %26, %31 : vector<16x1xf32>
    %c0_12 = arith.constant 0 : index
    %c0_13 = arith.constant 0 : index
    %33 = vector.load %arg7[%c0_12, %c0_13] : memref<16x1xf32, #tpu.memory_space<vmem>>, vector<16x1xf32>
    tpu.vector_store %arg7[%c0_12, %c0_13], %32 {strides = array<i32>} : memref<16x1xf32, #tpu.memory_space<vmem>>, vector<16x1xf32>,
    %c0_14 = arith.constant 0 : index
    %c0_15 = arith.constant 0 : index
    %34 = vector.load %arg6[%c0_14, %c0_15] : memref<16x1xf32, #tpu.memory_space<vmem>>, vector<16x1xf32>
    tpu.vector_store %arg6[%c0_14, %c0_15], %22 {strides = array<i32>} : memref<16x1xf32, #tpu.memory_space<vmem>>, vector<16x1xf32>,
    %c0_i32_16 = arith.constant 0 : i32
    %35 = arith.cmpi eq, %arg1, %c0_i32_16 : i32
    %36 = arith.extui %35 : i1 to i32
    %c0_i32_17 = arith.constant 0 : i32
    %37 = arith.cmpi ne, %36, %c0_i32_17 : i32
    scf.if %37 {
      %c0_18 = arith.constant 0 : index
      %c0_19 = arith.constant 0 : index
      %38 = vector.load %arg6[%c0_18, %c0_19] : memref<16x1xf32, #tpu.memory_space<vmem>>, vector<16x1xf32>
      %c0_20 = arith.constant 0 : index
      %c0_21 = arith.constant 0 : index
      %39 = vector.load %arg7[%c0_20, %c0_21] : memref<16x1xf32, #tpu.memory_space<vmem>>, vector<16x1xf32>
      %cst_22 = arith.constant 0.000000e+00 : f32
      %40 = vector.broadcast %cst_22 : f32 to vector<16x1xf32>
      %41 = arith.subf %40, %38 : vector<16x1xf32>
      %42 = math.exp %41 : vector<16x1xf32>
      %cst_23 = arith.constant 4.000000e+01 : f32
      %43 = vector.broadcast %cst_23 : f32 to vector<16x1xf32>
      %44 = arith.mulf %43, %42 : vector<16x1xf32>
      %45 = arith.subf %39, %44 : vector<16x1xf32>
      %c0_24 = arith.constant 0 : index
      %c0_25 = arith.constant 0 : index
      %46 = vector.load %arg3[%c0_24, %c0_25] : memref<16x128xf32, #tpu.memory_space<vmem>>, vector<16x128xf32>
      %47 = arith.mulf %5, %46 : vector<16x128xf32>
      %cst_26 = arith.constant dense<0.000000e+00> : vector<16xf32>
      %48 = vector.multi_reduction <add>, %47, %cst_26 [1] : vector<16x128xf32> to vector<16xf32>
      %49 = vector.shape_cast %48 : vector<16xf32> to vector<16x1xf32>
      %50 = math.log %45 : vector<16x1xf32>
      %51 = arith.addf %38, %50 : vector<16x1xf32>
      %52 = arith.subf %51, %49 : vector<16x1xf32>
      %c16_i32_27 = arith.constant 16 : i32
      %53 = arith.muli %arg0, %c16_i32_27 : i32
      %54 = tpu.iota {dimensions = array<i32: 0>} : vector<16x1xi32>
      %55 = vector.broadcast %53 : i32 to vector<16x1xi32>
      %56 = arith.addi %55, %54 : vector<16x1xi32>
      %c44_i32 = arith.constant 44 : i32
      %57 = vector.broadcast %c44_i32 : i32 to vector<16x1xi32>
      %58 = arith.cmpi slt, %56, %57 : vector<16x1xi32>
      %cst_28 = arith.constant 0.000000e+00 : f32
      %59 = vector.broadcast %cst_28 : f32 to vector<16x1xf32>
      %60 = arith.select %58, %52, %59 : vector<16x1xi1>, vector<16x1xf32>
      %61 = vector.shape_cast %60 : vector<16x1xf32> to vector<1x16x1xf32>
      %cst_29 = arith.constant dense<0.000000e+00> : vector<1xf32>
      %62 = vector.multi_reduction <add>, %61, %cst_29 [1, 2] : vector<1x16x1xf32> to vector<1xf32>
      %63 = vector.shape_cast %62 : vector<1xf32> to vector<1x1x1xf32>
      %64 = vector.extract %63[0, 0, 0] : f32 from vector<1x1x1xf32>
      %65 = vector.broadcast %64 : f32 to vector<8x128xf32>
      %c0_30 = arith.constant 0 : index
      %c0_31 = arith.constant 0 : index
      %66 = vector.load %arg5[%c0_30, %c0_31] : memref<8x128xf32, #tpu.memory_space<vmem>>, vector<8x128xf32>
      tpu.vector_store %arg5[%c0_30, %c0_31], %65 {strides = array<i32>} : memref<8x128xf32, #tpu.memory_space<vmem>>, vector<8x128xf32>,
    } else {
    }
    return
  }
  func.func @transform_0(%arg0: i32, %arg1: i32) -> (i32, i32) {
    %c0_i32 = arith.constant 0 : i32
    %c0_i32_0 = arith.constant 0 : i32
    return %arg0, %c0_i32 : i32, i32
  }
  func.func @transform_1(%arg0: i32, %arg1: i32) -> (i32, i32) {
    %c0_i32 = arith.constant 0 : i32
    %c0_i32_0 = arith.constant 0 : i32
    return %arg0, %c0_i32 : i32, i32
  }
  func.func @transform_2(%arg0: i32, %arg1: i32) -> (i32, i32) {
    %c0_i32 = arith.constant 0 : i32
    %c0_i32_0 = arith.constant 0 : i32
    return %c0_i32, %arg1 : i32, i32
  }
  func.func @transform_3(%arg0: i32, %arg1: i32) -> (i32, i32) {
    %c0_i32 = arith.constant 0 : i32
    %c0_i32_0 = arith.constant 0 : i32
    return %arg0, %c0_i32 : i32, i32
  }
}

</mosaic_0001>

<bundles_post_ra>
// kernel: tpu_custom_call.1
= control target key start
LH: loop header
LB: loop body
LE: loop exit
PB: predicated region body
PF: predicated region fallthrough
CT: control target
= control target key end

     0   :  { %s1320_s0 = inlined_call_operand.hbm [shape: f32[48,128], index: 0, kind: input, shape index: {}]   ;;  %s1321_s1 = inlined_call_operand.hbm [shape: f32[48,128], index: 1, kind: input, shape index: {}]   ;;  %s1322_s2 = inlined_call_operand.hbm [shape: f32[128,128], index: 2, kind: input, shape index: {}]   ;;  %s1323_s3 = inlined_call_operand.hbm [shape: f32[24,128], index: 3, kind: output, shape index: {}]  }
   0x1   :  { %1331 = sst [smem:[#allocation15_spill]] %s1320_s0 }
   0x2   :  { %1332 = sst [smem:[#allocation16_spill]] %s1322_s2 }
   0x3   :  { %8 = vsyncpa [#allocation5], 0 }
   0x4   :  { %10 = vsyncpa [#allocation5 + $0x1], 0 }
   0x5   :  { %11 = vsyncpa [#allocation8], 0 }
   0x6   :  { %13 = vsyncpa [#allocation8 + $0x1], 0 }
   0x7   :  { %14 = vsyncpa [#allocation6], 0 }
   0x8   :  { %16 = vsyncpa [#allocation6 + $0x1], 0  ;;  %s1026_s12 = smov 0   ;;  %s1028_s13 = smov 0  }
   0x9   :  { %s1030_s14 = smov 0   ;;  %s1032_s15 = smov 0  }
   0xa   :  { %s1034_s16 = smov 0   ;;  %s1036_s17 = smov 0  }
   0xb LB: > { %s1057_s18 = sadd.s32 4294967295, %s995_s17   ;;  %s607_s19 = sadd.s32 4294967294, %s995_s17   ;;  %s995_s17 = sphi %s1036_s17, %s22_s17   ;;  %s991_s16 = sphi %s1034_s16, %s1354_s16   ;;  %s987_s15 = sphi %s1032_s15, %s1353_s15   ;;  %s983_s14 = sphi %s1030_s14, %s1352_s14   ;;  %s979_s13 = sphi %s1028_s13, %s1351_s13   ;;  %s975_s12 = sphi %s1026_s12, %s1350_s12  }
   0xc   : > { %p54_p0 = scmp.ne.s32.totalorder %s979_s13, %s975_s12  ;;  %p1324_p1 = scmp.eq.s32.totalorder %s1057_s18, 0 }
   0xd   : > { %p136_p3 = scmp.eq.s32.totalorder %s607_s19, 2  ;;  %p608_p5 = scmp.ge.s32.totalorder %s995_s17, 1 }
   0xe   : > { %p1066_p4 = por %p1324_p1, %p54_p0  ;;  %p143_p7 = scmp.lt.s32.totalorder %s995_s17, 4 }
   0xf   : > { %p1071_p6 = por %p136_p3, %p54_p0  ;;  %s997_s23 = smov [#allocation9]  }
  0x10   : > { %s1333_s20 = scalar_select %p1066_p4, 1, 0 }
  0x11   : > { %s1334_s21 = scalar_select %p1071_p6, 1, 0 }
  0x12   : > { %p1076_p8 = pnand %p608_p5, %p143_p7  ;;  %s157_s24 = sshll.u32 %s997_s23, 4  ;;  %s158_s24 = int_to_ptr.vmem [resolvable:$true] %s157_s24 }
  0x13   : > { %s34_s26 = sadd.s32 1, %s991_s16  ;;  %s1337_s2 = sld [smem:[#allocation16_spill]] }
  0x14   : > { %s1335_s22 = scalar_select %p1076_p8, 1, 0 }
  0x15   : > { %p726_p9 = pneg %p1076_p8 }
  0x17   : > { %p1084_p10 = pnand %p726_p9, %p1324_p1 }
  0x19   : > { %s817_s29 = scalar_lea.hbm %s1337_s2, 2048  ;;  %p819_p12 = pneg %p1084_p10 }
  0x1a   : > { %p818_p11 = scmp.ne.s32.totalorder %s1337_s2, %s817_s29  ;;  %p824_p3 = scmp.lt.u32.totalorder %s817_s29, %s1337_s2 }
  0x1c   : > { %p820_p13 = pnand %p819_p12, %p818_p11 }
  0x1e   : > { %p821_p0 = pneg %p820_p13 }
  0x20   : > { %p826_p5 = pnand %p824_p3, %p821_p0 }
  0x22   : > { %829 = shalt.err (!%p826_p5)
}
  0x23   : > { %s830_s7 = scalar_lea.vmem %s158_s24, 2048  ;;  %p838_p2 = scmp.lt.s32.totalorder %s158_s24, %s158_s24 }
  0x24   : > { %p831_p7 = scmp.ne.s32.totalorder %s158_s24, %s830_s7  ;;  %p839_p6 = scmp.lt.s32.totalorder %s830_s7, %s830_s7 }
  0x26   : > { %p833_p9 = pnand %p831_p7, %p819_p12  ;;  %p840_p4 = por %p839_p6, %p838_p2 }
  0x28   : > { %p834_p1 = pneg %p833_p9 }
  0x2a   : > { %p841_p8 = pnand %p840_p4, %p834_p1 }
  0x2c   : > { %844 = shalt.err (!%p841_p8)
}
  0x2d   : > { %s1327_s8 = smov 128   ;;  %s1329_s9 = smov 8  }
  0x2e   : > { %729 = dma.hbm_to_vmem [thread:$0]  (!%p1084_p10), %s1337_s2, 2048, %s158_s24, [#allocation8], %s1327_s8, %s1327_s8, %s1329_s9  }
  0x2f   : > { %p36_p1 = scmp.ge.s32.totalorder %s34_s26, 3  ;;  %s41_s19 = sadd.s32 1, %s983_s14 }
  0x30   : > { %p48_p2 = scmp.ne.s32.totalorder %s983_s14, %s979_s13  ;;  %p49_p4 = scmp.eq.s32.totalorder %s995_s17, 0 }
  0x31   : > { %s1356_s26 = smov (%p36_p1, %s34_s26), 0  ;;  %p1339_p8 = scmp.eq.s32.totalorder %s1057_s18, 2 }
  0x32   : > { %p1114_p6 = por %p49_p4, %p48_p2  ;;  %s38_s27 = ssub.s32 %s991_s16, %s1356_s26 }
  0x33   : > { %p1120_p11 = por %p1339_p8, %p48_p2  ;;  %p742_p12 = scmp.lt.s32.totalorder %s995_s17, 3 }
  0x34   : > { %p39_p10 = scmp.eq.s32.totalorder %s38_s27, 0  ;;  %s171_s24 = sand.u32 1, %s983_s14  }
  0x35   : > { %s611_s28 = sshll.u32 %s171_s24, 4  ;;  %s627_s30 = sshll.u32 %s991_s16, 8 }
  0x36   : > { %s1129_s29 = scalar_select %p39_p10, %s983_s14, %s41_s19  }
  0x37   : > { %s1341_s0 = sld [smem:[#allocation15_spill]]  ;;  %s175_s7 = scalar_lea.vmem [#allocation4], %s611_s28 }
  0x38   : > { %s182_s10 = sshll.u32 %s175_s7, 4  ;;  %p1141_p13 = pnand %p742_p12, %p1114_p6  ;;  %s1137_s10 = int_to_ptr.vmem [resolvable:$true] %s182_s10 }
  0x39   : > { %s1148_s4 = scalar_lea.hbm %s1321_s1, %s627_s30  ;;  %s196_s5 = scalar_lea.vmem [#allocation7], %s611_s28 }
  0x3a   : > { %s1150_s8 = sshll.u32 %s196_s5, 4  ;;  %s1152_s9 = scalar_lea.sflag [#allocation5], %s171_s24  ;;  %s1184_s8 = int_to_ptr.vmem [resolvable:$true] %s1150_s8 }
  0x3b   : > { %p847_p3 = pneg %p1141_p13 }
  0x3d   : > { %s1135_s6 = scalar_lea.hbm %s1341_s0, %s627_s30  ;;  %s850_s19 = scalar_lea.hbm %s1341_s0, 768 }
  0x3e   : > { %s845_s7 = scalar_lea.hbm %s1135_s6, 256  ;;  %p851_p9 = scmp.lt.u32.totalorder %s1135_s6, %s1341_s0 }
  0x3f   : > { %p846_p0 = scmp.ne.s32.totalorder %s1135_s6, %s845_s7  ;;  %p852_p1 = scmp.lt.u32.totalorder %s850_s19, %s845_s7 }
  0x40   : > { %p854_p4 = scmp.lt.u32.totalorder %s845_s7, %s1135_s6 }
  0x41   : > { %p848_p5 = pnand %p847_p3, %p846_p0  ;;  %p853_p2 = por %p852_p1, %p851_p9 }
  0x43   : > { %p849_p7 = pneg %p848_p5  ;;  %p855_p6 = por %p854_p4, %p853_p2 }
  0x45   : > { %p856_p8 = pnand %p855_p6, %p849_p7 }
  0x47   : > { %859 = shalt.err (!%p856_p8)
}
  0x48   : > { %s860_s24 = scalar_lea.vmem %s1137_s10, 256  ;;  %s1000_s2 = smov [#allocation4]  }
  0x49   : > { %p861_p12 = scmp.ne.s32.totalorder %s1137_s10, %s860_s24  ;;  %s865_s28 = sshll.u32 %s1000_s2, 4  ;;  %s866_s28 = int_to_ptr.vmem [resolvable:$false] %s865_s28 }
  0x4a   : > { %s867_s5 = scalar_lea.vmem %s866_s28, 512  ;;  %p868_p5 = scmp.lt.s32.totalorder %s1137_s10, %s866_s28 }
  0x4b   : > { %p863_p10 = pnand %p861_p12, %p847_p3  ;;  %p869_p9 = scmp.lt.s32.totalorder %s867_s5, %s860_s24 }
  0x4d   : > { %p864_p0 = pneg %p863_p10  ;;  %p870_p1 = por %p869_p9, %p868_p5 }
  0x4f   : > { %p871_p2 = pnand %p870_p1, %p864_p0 }
  0x51   : > { %874 = shalt.err (!%p871_p2)
}
  0x52   : > { %s1343_s7 = smov 8   ;;  %s1344_s23 = smov 128  }
  0x53   : > { %733 = dma.hbm_to_vmem [thread:$0]  (!%p1141_p13), %s1135_s6, 256, %s1137_s10, %s1152_s9, %s1344_s23, %s1344_s23, %s1343_s7  }
  0x54   : > { %s192_s19 = sand.u32 1, %s995_s17   ;;  %s875_s30 = scalar_lea.hbm %s1148_s4, 256 }
  0x55   : > { %s1187_s27 = scalar_lea.sflag [#allocation8], %s192_s19  ;;  %p876_p7 = scmp.ne.s32.totalorder %s1148_s4, %s875_s30 }
  0x56   : > { %s880_s28 = scalar_lea.hbm %s1321_s1, 768  ;;  %p881_p8 = scmp.lt.u32.totalorder %s1148_s4, %s1321_s1 }
  0x57   : > { %p878_p4 = pnand %p876_p7, %p847_p3  ;;  %p882_p12 = scmp.lt.u32.totalorder %s880_s28, %s875_s30 }
  0x58   : > { %p884_p0 = scmp.lt.u32.totalorder %s875_s30, %s1148_s4 }
  0x59   : > { %p879_p6 = pneg %p878_p4  ;;  %p883_p10 = por %p882_p12, %p881_p8 }
  0x5b   : > { %p885_p5 = por %p884_p0, %p883_p10 }
  0x5d   : > { %p886_p9 = pnand %p885_p5, %p879_p6 }
  0x5f   : > { %889 = shalt.err (!%p886_p9)
}
  0x60   : > { %s890_s9 = scalar_lea.vmem %s1184_s8, 256  ;;  %s1001_s6 = smov [#allocation7]  }
  0x61   : > { %p891_p1 = scmp.ne.s32.totalorder %s1184_s8, %s890_s9  ;;  %s895_s10 = sshll.u32 %s1001_s6, 4  ;;  %s896_s10 = int_to_ptr.vmem [resolvable:$false] %s895_s10 }
  0x62   : > { %s897_s0 = scalar_lea.vmem %s896_s10, 512  ;;  %p898_p4 = scmp.lt.s32.totalorder %s1184_s8, %s896_s10 }
  0x63   : > { %p893_p2 = pnand %p891_p1, %p847_p3  ;;  %p899_p8 = scmp.lt.s32.totalorder %s897_s0, %s890_s9 }
  0x65   : > { %p894_p7 = pneg %p893_p2  ;;  %p900_p12 = por %p899_p8, %p898_p4 }
  0x67   : > { %p901_p10 = pnand %p900_p12, %p894_p7 }
  0x69   : > { %904 = shalt.err (!%p901_p10)
}
  0x6a   : > { %736 = dma.hbm_to_vmem [thread:$0]  (!%p1141_p13), %s1148_s4, 256, %s1184_s8, %s1187_s27, %s1344_s23, %s1344_s23, %s1343_s7  }
  0x6b   : > { %p1345_p3 = scmp.ne.s32.totalorder %s1335_s22, 0 }
  0x6c   : > { %s1219_s19 = sand.u32 (!%p1345_p3), 1, %s979_s13   ;;  %p1346_p6 = scmp.ne.s32.totalorder (!%p1345_p3), %s1333_s20, 0 }
  0x6d   : > { %215 = sbr.rel (%p1345_p3) target bundleno = 1057 (0x421), region = 32  ;;  %s618_s30 = sshll.u32 (!%p1345_p3), %s1219_s19, 4 }
  0x6e   : > { %s218_s24 = scalar_lea.sflag (!%p1345_p3), [#allocation5], %s1219_s19  ;;  %s1223_s2 = scalar_lea.vmem (!%p1345_p3), [#allocation4], %s618_s30 }
  0x74   : > { %958 = dma.done.wait (%p1346_p6), %s218_s24, 256  }
  0x75   : > { %960 = vsyncadd (%p1346_p6), %s218_s24, 4294967040  ;;  %s226_s8 = sand.u32 1, %s1057_s18   ;;  %s1230_s11 = scalar_lea.vmem [#allocation7], %s618_s30 }
  0x76   : > { %s227_s22 = scalar_lea.sflag [#allocation8], %s226_s8 }
  0x77   : > { %962 = dma.done.wait (%p1346_p6), %s227_s22, 256  }
  0x78   : > { %964 = vsyncadd (%p1346_p6), %s227_s22, 4294967040  ;;  %p1347_p13 = scmp.eq.s32.totalorder %s1057_s18, 0 }
  0x7a   : > { %966 = dma.done.wait (%p1347_p13), [#allocation8], 2048   ;;  %p1348_p0 = pmov %p1347_p13 }
  0x7b   : > { %v277_v0 = vld [vmem:[#allocation9] sm:$0xff]  ;;  %v278_v1 = vld [vmem:[#allocation9 + $0x8] sm:$0xff]  ;;  %v279_v2 = vld [vmem:[#allocation9 + $0x10] sm:$0xff]  ;;  %vm268_vm0 = vcmask 7168   ;;  %v1002_v28 = vmov -1e+30   ;;  %v369_v29 = vlaneseq }
  0x7c   : > { %968 = vsyncadd (%p1348_p0), [#allocation8], 4294965248  ;;  %v682_v3 = vpack.c.bf16 %v278_v1, %v277_v0  ;;  %v280_v4 = vld [vmem:[#allocation9 + $0x18] sm:$0xff]  ;;  %v281_v6 = vld [vmem:[#allocation9 + $0x20] sm:$0xff]  ;;  %269 = vst.msk [vmem:[#allocation2] sm:$0xff] %vm268_vm0, %v1002_v28  ;;  %s622_s18 = sshll.u32 %s987_s15, 4 }
  0x7d   : > { %v686_v5 = vpack.c.bf16 %v280_v4, %v279_v2  ;;  %v282_v7 = vld [vmem:[#allocation9 + $0x28] sm:$0xff]  ;;  %v273_v9 = vld [vmem:[%s1223_s2] sm:$0xff]  ;;  %v284_v11 = vld [vmem:[#allocation9 + $0x38] sm:$0xff]  ;;  %270 = vst.msk [vmem:[#allocation2 + $0x8] sm:$0xff] %vm268_vm0, %v1002_v28  ;;  %v370_v30 = vshrl.u32 %v369_v29, 7  ;;  %v372_v31 = vstv %s622_s18  ;;  %v377_v33 = vand.u32 127, %v369_v29 }
  0x7e   : > { %683 = vmatprep.subr.bf16.mxu0 %v682_v3  ;;  %v690_v8 = vpack.c.bf16 %v282_v7, %v281_v6  ;;  %v283_v10 = vld [vmem:[#allocation9 + $0x30] sm:$0xff]  ;;  %v1241_v12 = vmul.f32 2.0, %v273_v9  ;;  %v285_v14 = vld [vmem:[#allocation9 + $0x40] sm:$0xff]  ;;  %v286_v15 = vld [vmem:[#allocation9 + $0x48] sm:$0xff]  ;;  %v1003_v40 = vmov 0   ;;  %v1004_v41 = vmov 0.0  }
  0x7f   : > { %685 = vmatpush3.bf16.msra.mxu0 %v682_v3  ;;  %v694_v13 = vpack.c.bf16 %v284_v11, %v283_v10  ;;  %v698_v16 = vpack.c.bf16 %v286_v15, %v285_v14  ;;  %v287_v17 = vld [vmem:[#allocation9 + $0x50] sm:$0xff]  ;;  %v288_v18 = vld [vmem:[#allocation9 + $0x58] sm:$0xff]  ;;  %v289_v20 = vld [vmem:[#allocation9 + $0x60] sm:$0xff]  ;;  %v1248_v32 = vadd.s32 %v372_v31, %v370_v30  ;;  %v371_v34 = vadd.s32 8, %v370_v30  ;;  %799 = vset.pattern.permute.xlu1 %v1003_v40  ;;  %s621_s20 = sshll.u32 %s1219_s19, 3  ;;  %s624_s23 = sshll.u32 %s987_s15, 7 }
  0x80   : > { %687 = vmatprep.subr.bf16.mxu0 %v686_v5  ;;  %679 = vmatprep.mubr.f32.mxu0 %v1241_v12  ;;  %v702_v19 = vpack.c.bf16 %v288_v18, %v287_v17  ;;  %v290_v21 = vld [vmem:[#allocation9 + $0x68] sm:$0xff]  ;;  %v291_v23 = vld [vmem:[#allocation9 + $0x70] sm:$0xff]  ;;  %v292_v24 = vld [vmem:[#allocation9 + $0x78] sm:$0xff]  ;;  %271 = vst.msk [vmem:[#allocation3] sm:$0xff] %vm268_vm0, %v1004_v41  ;;  %s261_s4 = scalar_lea.vmem [#allocation10], %s621_s20  ;;  %s1274_s9 = scalar_lea.hbm %s1323_s3, %s624_s23 }
  0x81   : > { %v706_v22 = vpack.c.bf16 %v290_v21, %v289_v20  ;;  %v710_v25 = vpack.c.bf16 %v292_v24, %v291_v23  ;;  %v274_v26 = vld [vmem:[%s1223_s2 + $0x8] sm:$0xff]  ;;  %vm380_vm1 = vcmp.eq.s32.totalorder %v377_v33, %v1248_v32  ;;  %v1251_v35 = vadd.s32 %v372_v31, %v371_v34  ;;  %800 = vset.pattern.permute.xlu0 %v1003_v40  ;;  %v446_v56 = vld [vmem:[%s1230_s11] sm:$0xff]  ;;  %s494_s7 = sshll.u32 %s261_s4, 4  ;;  %s481_s6 = scalar_lea.sflag [#allocation6], %s1219_s19  ;;  %s1269_s7 = int_to_ptr.vmem [resolvable:$true] %s494_s7 }
  0x82   : > { %v276_v27 = vmul.f32 2.0, %v274_v26  ;;  %272 = vst.msk [vmem:[#allocation3 + $0x8] sm:$0xff] %vm268_vm0, %v1004_v41  ;;  %v448_v58 = vmul.f32 %v446_v56, %v1241_v12  ;;  %v447_v59 = vld [vmem:[%s1230_s11 + $0x8] sm:$0xff]  ;;  %vm462_vm3 = vcmp.lt.s32.totalorder %v1248_v32, 44  ;;  %s905_s10 = scalar_lea.vmem %s1269_s7, 128  ;;  %s1005_s15 = smov [#allocation10]  }
  0x83   : > { %689 = vmatpush3.bf16.msra.mxu0 %v686_v5  ;;  %vm381_vm2 = vcmp.eq.s32.totalorder %v377_v33, %v1251_v35  ;;  %v384_v42 = vld [vmem:[#allocation2] sm:$0xff]  ;;  %vm463_vm4 = vcmp.lt.s32.totalorder %v1251_v35, 44  ;;  %p906_p5 = scmp.ne.s32.totalorder %s1269_s7, %s905_s10  ;;  %s909_s0 = sshll.u32 %s1005_s15, 4  ;;  %s910_s0 = int_to_ptr.vmem [resolvable:$false] %s909_s0 }
  0x84   : > { %691 = vmatprep.subr.bf16.mxu0 %v690_v8  ;;  %v385_v45 = vld [vmem:[#allocation2 + $0x8] sm:$0xff]  ;;  %v449_v61 = vmul.f32 %v447_v59, %v276_v27  ;;  %s911_s30 = scalar_lea.vmem %s910_s0, 256  ;;  %p912_p2 = scmp.lt.s32.totalorder %s1269_s7, %s910_s0 }
  0x85   : > { %p907_p9 = pnand %p906_p5, %p1120_p11  ;;  %p913_p7 = scmp.lt.s32.totalorder %s911_s30, %s905_s10 }
  0x87   : > { %693 = vmatpush3.bf16.msra.mxu0 %v690_v8  ;;  %v398_v6 = vld [vmem:[#allocation3] sm:$0xff]  ;;  %p908_p1 = pneg %p907_p9  ;;  %p914_p4 = por %p913_p7, %p912_p2 }
  0x88   : > { %695 = vmatprep.subr.bf16.mxu0 %v694_v13 }
  0x89   : > { %v399_v11 = vld [vmem:[#allocation3 + $0x8] sm:$0xff]  ;;  %p915_p8 = pnand %p914_p4, %p908_p1 }
  0x8b   : > { %697 = vmatpush3.bf16.msra.mxu0 %v694_v13 }
  0x8c   : > { %699 = vmatprep.subr.bf16.mxu0 %v698_v16 }
  0x8f   : > { %701 = vmatpush3.bf16.msra.mxu0 %v698_v16 }
  0x90   : > { %703 = vmatprep.subr.bf16.mxu0 %v702_v19 }
  0x93   : > { %705 = vmatpush3.bf16.msra.mxu0 %v702_v19 }
  0x94   : > { %707 = vmatprep.subr.bf16.mxu0 %v706_v22 }
  0x97   : > { %709 = vmatpush3.bf16.msra.mxu0 %v706_v22 }
  0x98   : > { %711 = vmatprep.subr.bf16.mxu0 %v710_v25 }
  0x9b   : > { %713 = vmatpush3.bf16.msra.mxu0 %v710_v25 }
  0x9e   : > { %680 = vmatmul.mubr.f32.vlgmr.msra.gmra.mrb[0].mxu0 %v276_v27 }
 0x171   : > { %v681_v36 = vpop.f32.mrb[0].mxu0 }
 0x172   : > { %v359_v37 = vpop.f32.mrb[1].mxu0  ;;  %v383_v39 = vsel %vm381_vm2, -1e+30, %v681_v36 }
 0x173   : > { %v382_v38 = vsel %vm380_vm1, -1e+30, %v359_v37 }
 0x174   : > { %386 = vmax.xlane.f32.xlu0 %v382_v38 }
 0x178   : > { %388 = vmax.xlane.f32.xlu0 %v383_v39 }
 0x201   : > { %v387_v43 = vpop.xlane.xlu0 %386 }
 0x202   : > { %v390_v44 = vmax.f32 %v384_v42, %v387_v43 }
 0x204   : > { %v392_v46 = vsub.f32 %v384_v42, %v390_v44  ;;  %427 = vst.msk [vmem:[#allocation2] sm:$0xff] %vm268_vm0, %v390_v44  ;;  %404 = vperm.xlu1 %799, %v390_v44  }
 0x205   : > { %v389_v47 = vpop.xlane.xlu0 %388 }
 0x206   : > { %v391_v48 = vmax.f32 %v385_v45, %v389_v47  ;;  %v394_v62 = vmul.f32 1.442695, %v392_v46 }
 0x208   : > { %v393_v49 = vsub.f32 %v385_v45, %v391_v48  ;;  %428 = vst.msk [vmem:[#allocation2 + $0x8] sm:$0xff] %vm268_vm0, %v391_v48  ;;  %409 = vperm.xlu1 %799, %v391_v48  }
 0x20a   : > { %v396_v0 = vmul.f32 1.442695, %v393_v49 }
 0x20b   : > { %v432_v63 = vld [vmem:[#allocation2] sm:$0xff] }
 0x20c   : > { %v436_v1 = vsub.f32 0.0, %v432_v63 }
 0x20e   : > { %v438_v3 = vmul.f32 1.442695, %v436_v1 }
 0x20f   : > { %v433_v2 = vld [vmem:[#allocation2 + $0x8] sm:$0xff] }
 0x210   : > { %v437_v4 = vsub.f32 0.0, %v433_v2 }
 0x212   : > { %v440_v7 = vmul.f32 1.442695, %v437_v4 }
 0x283   : > { %v405_v50 = vpop.permute.xlu1 %404 }
 0x284   : > { %v412_v51 = vsub.f32 %v382_v38, %v405_v50 }
 0x286   : > { %v414_v52 = vmul.f32 1.442695, %v412_v51 }
 0x287   : > { %v410_v53 = vpop.permute.xlu1 %409 }
 0x288   : > { %801 = vpow2.f32 %v414_v52  ;;  %v413_v54 = vsub.f32 %v383_v39, %v410_v53 }
 0x28a   : > { %v416_v55 = vmul.f32 1.442695, %v413_v54 }
 0x28c   : > { %803 = vpow2.f32 %v416_v55 }
 0x28d   : > { %805 = vpow2.f32 %v394_v62 }
 0x28e   : > { %807 = vpow2.f32 %v396_v0 }
 0x28f   : > { %809 = vpow2.f32 %v438_v3 }
 0x290   : > { %811 = vpow2.f32 %v440_v7 }
 0x292   : > { %v802_v57 = vpop.eup %801 }
 0x293   : > { %418 = vadd.xlane.f32.xlu0 %v802_v57 }
 0x296   : > { %v804_v60 = vpop.eup %803 }
 0x297   : > { %420 = vadd.xlane.f32.xlu1 %v804_v60  ;;  %450 = vadd.xlane.f32.xlu0 %v448_v58  ;;  %v806_v5 = vpop.eup %805 }
 0x298   : > { %v400_v8 = vmul.f32 %v806_v5, %v398_v6  ;;  %v808_v9 = vpop.eup %807 }
 0x299   : > { %v401_v13 = vmul.f32 %v808_v9, %v399_v11  ;;  %v810_v16 = vpop.eup %809 }
 0x29a   : > { %v442_v17 = vmul.f32 40.0, %v810_v16  ;;  %v812_v18 = vpop.eup %811 }
 0x29b   : > { %452 = vadd.xlane.f32.xlu0 %v449_v61  ;;  %v443_v21 = vmul.f32 40.0, %v812_v18 }
 0x320   : > { %v419_v10 = vpop.xlane.xlu0 %418 }
 0x321   : > { %v422_v12 = vadd.f32 %v419_v10, %v400_v8 }
 0x323   : > { %425 = vst.msk [vmem:[#allocation3] sm:$0xff] %vm268_vm0, %v422_v12 }
 0x324   : > { %v421_v14 = vpop.xlane.xlu1 %420  ;;  %v451_v25 = vpop.xlane.xlu0 %450 }
 0x325   : > { %v423_v15 = vadd.f32 %v421_v14, %v401_v13 }
 0x327   : > { %426 = vst.msk [vmem:[#allocation3 + $0x8] sm:$0xff] %vm268_vm0, %v423_v15 }
 0x328   : > { %v453_v31 = vpop.xlane.xlu0 %452 }
 0x32a   : > { %v434_v19 = vld [vmem:[#allocation3] sm:$0xff] }
 0x32b   : > { %v444_v20 = vsub.f32 %v434_v19, %v442_v17 }
 0x32d   : > { %813 = vlog2.f32 %v444_v20 }
 0x32e   : > { %v435_v22 = vld [vmem:[#allocation3 + $0x8] sm:$0xff] }
 0x32f   : > { %v445_v23 = vsub.f32 %v435_v22, %v443_v21 }
 0x331   : > { %815 = vlog2.f32 %v445_v23 }
 0x337   : > { %v814_v24 = vpop.eup %813 }
 0x338   : > { %v455_v26 = vmul.f32 0.6931472, %v814_v24 }
 0x33a   : > { %v458_v27 = vadd.f32 %v455_v26, %v432_v63 }
 0x33b   : > { %v816_v28 = vpop.eup %815 }
 0x33c   : > { %v460_v29 = vsub.f32 %v458_v27, %v451_v25  ;;  %v457_v30 = vmul.f32 0.6931472, %v816_v28 }
 0x33e   : > { %v459_v33 = vadd.f32 %v457_v30, %v433_v2  ;;  %v464_v34 = vsel %vm462_vm3, %v460_v29, 0.0 }
 0x33f   : > { %v466_v38 = vsel %vm268_vm0, %v464_v34, 0.0 }
 0x340   : > { %v461_v36 = vsub.f32 %v459_v33, %v453_v31 }
 0x342   : > { %v465_v37 = vsel %vm463_vm4, %v461_v36, 0.0 }
 0x343   : > { %v467_v39 = vsel %vm268_vm0, %v465_v37, 0.0 }
 0x344   : > { %v468_v40 = vadd.f32 %v467_v39, %v466_v38 }
 0x346   : > { %469 = vadd.xlane.f32.xlu0 %v468_v40 }
 0x3d3   : > { %v470_v41 = vpop.xlane.xlu0 %469 }
 0x3d4   : > { %v471_v42 = vrot.slane %v470_v41, 4 }
 0x3d6   : > { %v472_v43 = vadd.f32 %v471_v42, %v470_v41 }
 0x3d8   : > { %v473_v32 = vrot.slane %v472_v43, 2 }
 0x3da   : > { %v474_v44 = vadd.f32 %v473_v32, %v472_v43 }
 0x3dc   : > { %v475_v45 = vrot.slane %v474_v44, 1 }
 0x3de   : > { %v476_v35 = vadd.f32 %v475_v45, %v474_v44 }
 0x3e0   : > { %714 = vpush %v476_v35 }
 0x411   : > { %s715_s27 = spop %714 }
 0x412   : > { %v478_v46 = vstv %s715_s27 }
 0x413   : > { %479 = vst [vmem:[%s261_s4] sm:$0xff] %v478_v46 }
 0x414   : > { %918 = shalt.err (!%p915_p8)
}
 0x415   : > { %s919_s19 = scalar_lea.hbm %s1274_s9, 128  ;;  %s923_s8 = scalar_lea.hbm %s1323_s3, 384 }
 0x416   : > { %p920_p12 = scmp.ne.s32.totalorder %s1274_s9, %s919_s19  ;;  %p924_p6 = scmp.lt.u32.totalorder %s1274_s9, %s1323_s3 }
 0x417   : > { %p925_p13 = scmp.lt.u32.totalorder %s923_s8, %s919_s19  ;;  %p927_p5 = scmp.lt.u32.totalorder %s919_s19, %s1274_s9 }
 0x418   : > { %p921_p10 = pnand %p920_p12, %p1120_p11 }
 0x419   : > { %p926_p0 = por %p925_p13, %p924_p6 }
 0x41a   : > { %p922_p3 = pneg %p921_p10 }
 0x41b   : > { %p928_p9 = por %p927_p5, %p926_p0 }
 0x41d   : > { %p929_p1 = pnand %p928_p9, %p922_p3 }
 0x41f   : > { %932 = shalt.err (!%p929_p1)
}
 0x420   : > { %724 = dma.vmem_to_hbm [thread:$0]  (%p1120_p11), %s1269_s7, 128, %s1274_s9, %s481_s6  }
 0x421 PF: > { %p744_p2 = scmp.ge.s32.totalorder %s995_s17, 2  ;;  %s506_s18 = sand.u32 1, %s975_s12  }
 0x422   : > { %p1349_p7 = scmp.ne.s32.totalorder %s1334_s21, 0  ;;  %s507_s20 = scalar_lea.sflag [#allocation6], %s506_s18 }
 0x424   : > { %p738_p4 = pnand %p744_p2, %p1349_p7 }
 0x426   : > { %970 = dma.done.wait (!%p738_p4), %s507_s20, 128  }
 0x427   : > { %972 = vsyncadd (!%p738_p4), %s507_s20, 4294967168  ;;  %s22_s17 = sadd.s32 1, %s995_s17   ;;  %s1350_s12 = smov %s979_s13 }
 0x428   : > { %p19_p8 = scmp.ge.s32.totalorder %s22_s17, 5   ;;  %s1351_s13 = smov %s983_s14 }
 0x429   : > { %s1352_s14 = smov %s1129_s29  ;;  %s1353_s15 = smov %s991_s16 }
 0x42a   : > { %s1354_s16 = smov %s1356_s26  ;;  %21 = sbr.rel (!%p19_p8) target bundleno = 11 (0xb), region = 103 }
 0x431   :  { %512 = vsyncpa [#allocation5], 1 }
 0x432   :  { %514 = vsyncpa [#allocation5 + $0x1], 1 }
 0x433   :  { %515 = vsyncpa [#allocation8], 1 }
 0x434   :  { %517 = vsyncpa [#allocation8 + $0x1], 1 }
 0x435   :  { %518 = vsyncpa [#allocation6], 1 }
 0x436   :  { %520 = vsyncpa [#allocation6 + $0x1], 1 }

</bundles_post_ra>
